<compile_context>
chip_gen: v6e
topology: v6e:2x2x1
jax: 0.10.0
libtpu: 0.0.40
codegen_flags: <defaults>
</compile_context>

<pallas_src>
import math
from functools import partial

import jax
import jax.numpy as jnp
from jax.experimental import pallas as pl
from jax.experimental.pallas import tpu as pltpu


def _mha_block_kernel(x_ref, w_in_ref, b_in_ref, w_out_ref, b_out_ref,
                      gamma_ref, beta_ref, o_ref, *, num_heads):
    """One batch tile (Bt, S, E): QKV proj -> batched-head attention ->
    out proj -> residual + LayerNorm."""
    Bt, S, E = x_ref.shape
    H = num_heads
    hd = E // H

    x = x_ref[...].astype(jnp.float32)                 # (Bt, S, E), residual
    x2d = x.reshape(Bt * S, E)                         # fuse batch & seq rows

    # ---- packed in-projection on the fused slab: bf16 MXU, f32 accumulate.
    # 1/sqrt(hd) is already folded into the Q columns of W/b on the host.
    qkv = jnp.dot(x2d.astype(jnp.bfloat16), w_in_ref[...],
                  preferred_element_type=jnp.float32) + b_in_ref[0]  # (Bt*S,3E)

    # ---- head-batched layout: lane-aligned slices at 0/E/2E only, one
    # reshape+transpose per tensor (no per-head 32-wide lane slicing).
    def to_heads(t):
        t = t.reshape(Bt, S, H, hd).transpose(0, 2, 1, 3)   # (Bt, H, S, hd)
        return t.reshape(Bt * H, S, hd).astype(jnp.bfloat16)

    q = to_heads(qkv[:, 0 * E:1 * E])
    k = to_heads(qkv[:, 1 * E:2 * E])
    v = to_heads(qkv[:, 2 * E:3 * E])

    # ---- scores + softmax, batched over all (batch, head) pairs at once ----
    s = jnp.einsum('bqd,bkd->bqk', q, k,
                   preferred_element_type=jnp.float32)       # (Bt*H, S, S)
    s = s - jnp.max(s, axis=-1, keepdims=True)
    p = jnp.exp(s)
    p = p * pl.reciprocal(jnp.sum(p, axis=-1, keepdims=True), approx=True)

    z = jnp.einsum('bqk,bkd->bqd', p.astype(jnp.bfloat16), v,
                   preferred_element_type=jnp.float32)       # (Bt*H, S, hd) f32

    # ---- back to fused-row layout (single transpose+reshape, no lane-dim
    # concatenate), then one K=E output projection on the MXU.
    attn = z.reshape(Bt, H, S, hd).transpose(0, 2, 1, 3).reshape(Bt * S, E)
    out = jnp.dot(attn.astype(jnp.bfloat16), w_out_ref[...],
                  preferred_element_type=jnp.float32) + b_out_ref[0]  # (Bt*S,E)

    # ---- residual + LayerNorm (eps = 1e-5, biased variance), all f32 ----
    y = out + x2d
    mu = jnp.mean(y, axis=-1, keepdims=True)
    var = jnp.mean((y - mu) ** 2, axis=-1, keepdims=True)
    y = (y - mu) * jax.lax.rsqrt(var + 1e-5)
    y = y * gamma_ref[0] + beta_ref[0]

    o_ref[...] = y.reshape(Bt, S, E).astype(o_ref.dtype)


def _per_step_vmem_bytes(block_b, S, E, H):
    """Rough per-grid-step VMEM footprint: resident weights + double-buffered
    x/out tiles + f32/bf16 intermediates."""
    rows = block_b * S
    weights = (E * 3 * E + E * E) * 2 + (3 * E + 3 * E) * 4   # bf16 W, f32 b/gamma/beta
    io = 2 * 2 * rows * E * 4                                 # x + out tiles, 2-deep
    interm = rows * (4 * E        # x f32
                     + 4 * 3 * E  # qkv f32
                     + 2 * 3 * E  # q/k/v bf16
                     + 4 * E      # attn f32
                     + 4 * E)     # out / y f32
    interm += block_b * H * S * S * (4 + 4 + 2)               # s f32, p f32, p bf16
    return weights + io + interm


def _pick_block_b(B, S, E, H, *, target_rows=2048,
                  vmem_budget=24 * 1024 * 1024):
    """Largest divisor of B with ~target_rows fused rows, bounded by VMEM.
    Capped at B//2 so the 'parallel' grid axis has >= 2 steps (v7x has two
    TensorCores; this is a no-op on single-core v5e/v6e)."""
    cap = B if B < 2 else B // 2
    best = 1
    for d in range(1, cap + 1):
        if B % d:
            continue
        if d > 1 and d * S > target_rows:
            continue
        if d > 1 and _per_step_vmem_bytes(d, S, E, H) > vmem_budget:
            continue
        best = d
    return best


def _vmem_limit_bytes(block_b, S, E, H):
    """Scoped-VMEM limit derived from the actual block sizes, with margin.
    Never claims the full 64 MiB of a v7x TensorCore (cap 48 MiB)."""
    est = _per_step_vmem_bytes(block_b, S, E, H)
    return int(min(max(2 * est, 16 * 1024 * 1024), 48 * 1024 * 1024))


def prepare_params(params, *, num_heads):
    """One-time host-side weight prep (hoisted out of the per-call path):
    fold 1/sqrt(head_dim) into the Q slice in f32, pre-transpose, cast bf16."""
    E = params["out_proj_weight"].shape[0]
    hd = E // num_heads
    scale = 1.0 / math.sqrt(hd)

    w_in = params["in_proj_weight"].astype(jnp.float32)        # (3E, E)
    b_in = params["in_proj_bias"].astype(jnp.float32)          # (3E,)
    qscale = jnp.concatenate([jnp.full((E,), scale, jnp.float32),
                              jnp.ones((2 * E,), jnp.float32)])
    w_in = w_in * qscale[:, None]                              # scale Q rows (f32)
    b_in = b_in * qscale

    return {
        "w_in_t": w_in.T.astype(jnp.bfloat16),                          # (E, 3E)
        "b_in": b_in[None, :],                                          # (1, 3E)
        "w_out_t": params["out_proj_weight"].T.astype(jnp.bfloat16),    # (E, E)
        "b_out": params["out_proj_bias"].astype(jnp.float32)[None, :],  # (1, E)
        "gamma": params["ln_weight"].astype(jnp.float32)[None, :],      # (1, E)
        "beta": params["ln_bias"].astype(jnp.float32)[None, :],         # (1, E)
    }


@partial(jax.jit, static_argnames=("num_heads", "block_b"))
def mha_block(x, prepped, *, num_heads, block_b=None):
    """x: (B, S, E) float32.  prepped: output of prepare_params."""
    B, S, E = x.shape
    assert E % num_heads == 0
    if block_b is None:
        block_b = _pick_block_b(B, S, E, num_heads)
    assert B % block_b == 0

    kernel = partial(_mha_block_kernel, num_heads=num_heads)
    const = lambda b: (0, 0)   # weights / biases: a single resident block

    return pl.pallas_call(
        kernel,
        out_shape=jax.ShapeDtypeStruct((B, S, E), x.dtype),
        grid_spec=pltpu.PrefetchScalarGridSpec(
            num_scalar_prefetch=0,
            grid=(B // block_b,),
            in_specs=[
                pl.BlockSpec((block_b, S, E), lambda b: (b, 0, 0)),  # x
                pl.BlockSpec((E, 3 * E), const),                     # in_proj W^T (bf16)
                pl.BlockSpec((1, 3 * E), const),                     # in_proj bias
                pl.BlockSpec((E, E), const),                         # out_proj W^T (bf16)
                pl.BlockSpec((1, E), const),                         # out_proj bias
                pl.BlockSpec((1, E), const),                         # LN gamma
                pl.BlockSpec((1, E), const),                         # LN beta
            ],
            out_specs=pl.BlockSpec((block_b, S, E), lambda b: (b, 0, 0)),
        ),
        compiler_params=pltpu.CompilerParams(
            dimension_semantics=("parallel",),
            vmem_limit_bytes=_vmem_limit_bytes(block_b, S, E, num_heads),
        ),
    )(x, prepped["w_in_t"], prepped["b_in"], prepped["w_out_t"],
      prepped["b_out"], prepped["gamma"], prepped["beta"])


def init_params(key, embed_dim):
    """Synthetic parameters matching nn.MultiheadAttention + nn.LayerNorm."""
    k1, k2, k3, k4 = jax.random.split(key, 4)
    E = embed_dim
    return {
        "in_proj_weight": 0.05 * jax.random.normal(k1, (3 * E, E), jnp.float32),
        "in_proj_bias": 0.01 * jax.random.normal(k2, (3 * E,), jnp.float32),
        "out_proj_weight": 0.05 * jax.random.normal(k3, (E, E), jnp.float32),
        "out_proj_bias": 0.01 * jax.random.normal(k4, (E,), jnp.float32),
        "ln_weight": jnp.ones((E,), jnp.float32),   # PyTorch LN defaults
        "ln_bias": jnp.zeros((E,), jnp.float32),
    }


def _reference(x, params, *, num_heads):
    """Pure-JAX f32 reference of the MHABlock forward (eval mode)."""
    B, S, E = x.shape
    H = num_heads
    hd = E // H
    hp = jax.lax.Precision.HIGHEST
    qkv = jnp.einsum('bse,fe->bsf', x, params["in_proj_weight"],
                     precision=hp) + params["in_proj_bias"]
    q, k, v = qkv[..., :E], qkv[..., E:2 * E], qkv[..., 2 * E:]
    q = q.reshape(B, S, H, hd).transpose(0, 2, 1, 3) / math.sqrt(hd)
    k = k.reshape(B, S, H, hd).transpose(0, 2, 1, 3)
    v = v.reshape(B, S, H, hd).transpose(0, 2, 1, 3)
    s = jnp.einsum('bhqd,bhkd->bhqk', q, k, precision=hp)
    p = jax.nn.softmax(s, axis=-1)
    a = jnp.einsum('bhqk,bhkd->bhqd', p, v, precision=hp)
    a = a.transpose(0, 2, 1, 3).reshape(B, S, E)
    out = jnp.einsum('bse,fe->bsf', a, params["out_proj_weight"],
                     precision=hp) + params["out_proj_bias"]
    y = out + x
    mu = y.mean(-1, keepdims=True)
    var = ((y - mu) ** 2).mean(-1, keepdims=True)
    return (y - mu) / jnp.sqrt(var + 1e-5) * params["ln_weight"] + params["ln_bias"]


if __name__ == "__main__":
    B, S, E, H = 2, 8, 128, 4   # batch, seq, embed_dim, num_heads

    key = jax.random.PRNGKey(0)
    kx, kp = jax.random.split(key)
    x = jax.random.normal(kx, (B, S, E), jnp.float32)
    params = init_params(kp, E)

    # One-time host-side prep (transpose + scale-fold + bf16 cast), reused
    # across calls instead of being redone every invocation.
    prepped = prepare_params(params, num_heads=H)

    out = jax.block_until_ready(mha_block(x, prepped, num_heads=H))

    assert out.shape == (B, S, E)
    assert bool(jnp.all(jnp.isfinite(out)))

    # bf16 matmul operands (f32 accumulation) -> loose tolerance vs f32 ref.
    ref = _reference(x, params, num_heads=H)
    max_err = float(jnp.max(jnp.abs(out - ref)))
    assert max_err < 5e-2, f"max abs err {max_err}"

    print("KERNEL_OK")
</pallas_src>

<mosaic_0001>
module attributes {stable_mosaic.version = 11 : i64} {
  func.func @_mha_block_kernel(%arg0: i32, %arg1: memref<1x8x128xf32, #tpu.memory_space<vmem>>, %arg2: memref<128x384xbf16, #tpu.memory_space<vmem>>, %arg3: memref<1x384xf32, #tpu.memory_space<vmem>>, %arg4: memref<128x128xbf16, #tpu.memory_space<vmem>>, %arg5: memref<1x128xf32, #tpu.memory_space<vmem>>, %arg6: memref<1x128xf32, #tpu.memory_space<vmem>>, %arg7: memref<1x128xf32, #tpu.memory_space<vmem>>, %arg8: memref<1x8x128xf32, #tpu.memory_space<vmem>>) attributes {dimension_semantics = [#tpu.dimension_semantics<parallel>], iteration_bounds = array<i64: 2>, scalar_prefetch = 0 : i64, scratch_operands = 0 : i64, tpu.core_type = #tpu.core_type<tc>, window_params = [{transform_indices = @transform_0, window_bounds = array<i64: 1, 8, 128>}, {pipeline_mode = #tpu.pipeline_mode<synchronous>, transform_indices = @transform_1, window_bounds = array<i64: 128, 384>}, {pipeline_mode = #tpu.pipeline_mode<synchronous>, transform_indices = @transform_2, window_bounds = array<i64: 1, 384>}, {pipeline_mode = #tpu.pipeline_mode<synchronous>, transform_indices = @transform_3, window_bounds = array<i64: 128, 128>}, {pipeline_mode = #tpu.pipeline_mode<synchronous>, transform_indices = @transform_4, window_bounds = array<i64: 1, 128>}, {pipeline_mode = #tpu.pipeline_mode<synchronous>, transform_indices = @transform_5, window_bounds = array<i64: 1, 128>}, {pipeline_mode = #tpu.pipeline_mode<synchronous>, transform_indices = @transform_6, window_bounds = array<i64: 1, 128>}, {transform_indices = @transform_7, window_bounds = array<i64: 1, 8, 128>}]} {
    %c0 = arith.constant 0 : index
    %c0_0 = arith.constant 0 : index
    %c0_1 = arith.constant 0 : index
    %0 = vector.load %arg1[%c0, %c0_0, %c0_1] : memref<1x8x128xf32, #tpu.memory_space<vmem>>, vector<1x8x128xf32>
    %1 = vector.shape_cast %0 : vector<1x8x128xf32> to vector<8x128xf32>
    %2 = arith.truncf %1 : vector<8x128xf32> to vector<8x128xbf16>
    %c0_2 = arith.constant 0 : index
    %c0_3 = arith.constant 0 : index
    %3 = vector.load %arg2[%c0_2, %c0_3] : memref<128x384xbf16, #tpu.memory_space<vmem>>, vector<128x384xbf16>
    %cst = arith.constant dense<0.000000e+00> : vector<8x384xf32>
    %4 = tpu.matmul %2, %3, %cst {dimension_numbers = #tpu.dot_dimension_numbers<[1], [0], [0], [1], [0, 0, 1, 1], [], []>} : vector<8x128xbf16>, vector<128x384xbf16>, vector<8x384xf32> -> vector<8x384xf32>
    %c0_4 = arith.constant 0 : index
    %c0_5 = arith.constant 0 : index
    %5 = vector.load %arg3[%c0_4, %c0_5] : memref<1x384xf32, #tpu.memory_space<vmem>>, vector<1x384xf32>
    %6 = vector.shape_cast %5 : vector<1x384xf32> to vector<384xf32>
    %7 = vector.shape_cast %6 : vector<384xf32> to vector<1x384xf32>
    %8 = vector.broadcast %7 : vector<1x384xf32> to vector<8x384xf32>
    %9 = arith.addf %4, %8 : vector<8x384xf32>
    %10 = vector.extract_strided_slice %9 {offsets = [0, 0], sizes = [8, 128], strides = [1, 1]} : vector<8x384xf32> to vector<8x128xf32>
    %11 = vector.shape_cast %10 : vector<8x128xf32> to vector<1x8x4x32xf32>
    %12 = tpu.transpose %11, [0, 2, 1, 3] : vector<1x8x4x32xf32> -> vector<1x4x8x32xf32>
    %13 = vector.shape_cast %12 : vector<1x4x8x32xf32> to vector<4x8x32xf32>
    %14 = arith.truncf %13 : vector<4x8x32xf32> to vector<4x8x32xbf16>
    %15 = vector.extract_strided_slice %9 {offsets = [0, 128], sizes = [8, 128], strides = [1, 1]} : vector<8x384xf32> to vector<8x128xf32>
    %16 = vector.shape_cast %15 : vector<8x128xf32> to vector<1x8x4x32xf32>
    %17 = tpu.transpose %16, [0, 2, 1, 3] : vector<1x8x4x32xf32> -> vector<1x4x8x32xf32>
    %18 = vector.shape_cast %17 : vector<1x4x8x32xf32> to vector<4x8x32xf32>
    %19 = arith.truncf %18 : vector<4x8x32xf32> to vector<4x8x32xbf16>
    %20 = vector.extract_strided_slice %9 {offsets = [0, 256], sizes = [8, 128], strides = [1, 1]} : vector<8x384xf32> to vector<8x128xf32>
    %21 = vector.shape_cast %20 : vector<8x128xf32> to vector<1x8x4x32xf32>
    %22 = tpu.transpose %21, [0, 2, 1, 3] : vector<1x8x4x32xf32> -> vector<1x4x8x32xf32>
    %23 = vector.shape_cast %22 : vector<1x4x8x32xf32> to vector<4x8x32xf32>
    %24 = arith.truncf %23 : vector<4x8x32xf32> to vector<4x8x32xbf16>
    "tpu.trace_start"() <{level = 10 : i32, message = "bqd,bkd->bqk"}> : () -> ()
    %cst_6 = arith.constant dense<0.000000e+00> : vector<4x8x8xf32>
    %25 = tpu.matmul %14, %19, %cst_6 {dimension_numbers = #tpu.dot_dimension_numbers<[2], [2], [1], [1], [0, 0, 0, 1, 1, 1], [0], [0]>} : vector<4x8x32xbf16>, vector<4x8x32xbf16>, vector<4x8x8xf32> -> vector<4x8x8xf32>
    "tpu.trace_stop"() : () -> ()
    %cst_7 = arith.constant dense<0xFF800000> : vector<4x8xf32>
    %26 = vector.multi_reduction <maximumf>, %25, %cst_7 [2] : vector<4x8x8xf32> to vector<4x8xf32>
    %27 = vector.shape_cast %26 : vector<4x8xf32> to vector<4x8x1xf32>
    %28 = vector.broadcast %27 : vector<4x8x1xf32> to vector<4x8x8xf32>
    %29 = arith.subf %25, %28 : vector<4x8x8xf32>
    %30 = math.exp %29 : vector<4x8x8xf32>
    %cst_8 = arith.constant dense<0.000000e+00> : vector<4x8xf32>
    %31 = vector.multi_reduction <add>, %30, %cst_8 [2] : vector<4x8x8xf32> to vector<4x8xf32>
    %32 = vector.shape_cast %31 : vector<4x8xf32> to vector<4x8x1xf32>
    %33 = tpu.reciprocal %32 {approx = true} : vector<4x8x1xf32> -> vector<4x8x1xf32>
    %34 = vector.broadcast %33 : vector<4x8x1xf32> to vector<4x8x8xf32>
    %35 = arith.mulf %30, %34 : vector<4x8x8xf32>
    %36 = arith.truncf %35 : vector<4x8x8xf32> to vector<4x8x8xbf16>
    "tpu.trace_start"() <{level = 10 : i32, message = "bqk,bkd->bqd"}> : () -> ()
    %cst_9 = arith.constant dense<0.000000e+00> : vector<4x8x32xf32>
    %37 = tpu.matmul %36, %24, %cst_9 {dimension_numbers = #tpu.dot_dimension_numbers<[2], [1], [1], [2], [0, 0, 0, 1, 1, 2], [0], [0]>} : vector<4x8x8xbf16>, vector<4x8x32xbf16>, vector<4x8x32xf32> -> vector<4x8x32xf32>
    "tpu.trace_stop"() : () -> ()
    %38 = vector.shape_cast %37 : vector<4x8x32xf32> to vector<1x4x8x32xf32>
    %39 = tpu.transpose %38, [0, 2, 1, 3] : vector<1x4x8x32xf32> -> vector<1x8x4x32xf32>
    %40 = vector.shape_cast %39 : vector<1x8x4x32xf32> to vector<8x128xf32>
    %41 = arith.truncf %40 : vector<8x128xf32> to vector<8x128xbf16>
    %c0_10 = arith.constant 0 : index
    %c0_11 = arith.constant 0 : index
    %42 = vector.load %arg4[%c0_10, %c0_11] : memref<128x128xbf16, #tpu.memory_space<vmem>>, vector<128x128xbf16>
    %cst_12 = arith.constant dense<0.000000e+00> : vector<8x128xf32>
    %43 = tpu.matmul %41, %42, %cst_12 {dimension_numbers = #tpu.dot_dimension_numbers<[1], [0], [0], [1], [0, 0, 1, 1], [], []>} : vector<8x128xbf16>, vector<128x128xbf16>, vector<8x128xf32> -> vector<8x128xf32>
    %c0_13 = arith.constant 0 : index
    %c0_14 = arith.constant 0 : index
    %44 = vector.load %arg5[%c0_13, %c0_14] : memref<1x128xf32, #tpu.memory_space<vmem>>, vector<1x128xf32>
    %45 = vector.shape_cast %44 : vector<1x128xf32> to vector<128xf32>
    %46 = vector.shape_cast %45 : vector<128xf32> to vector<1x128xf32>
    %47 = vector.broadcast %46 : vector<1x128xf32> to vector<8x128xf32>
    %48 = arith.addf %43, %47 : vector<8x128xf32>
    %49 = arith.addf %48, %1 : vector<8x128xf32>
    %cst_15 = arith.constant dense<0.000000e+00> : vector<8xf32>
    %50 = vector.multi_reduction <add>, %49, %cst_15 [1] : vector<8x128xf32> to vector<8xf32>
    %51 = vector.shape_cast %50 : vector<8xf32> to vector<8x1xf32>
    %cst_16 = arith.constant 1.280000e+02 : f32
    %52 = vector.broadcast %cst_16 : f32 to vector<8x1xf32>
    %53 = arith.divf %51, %52 : vector<8x1xf32>
    %54 = vector.broadcast %53 : vector<8x1xf32> to vector<8x128xf32>
    %55 = arith.subf %49, %54 : vector<8x128xf32>
    %56 = arith.mulf %55, %55 : vector<8x128xf32>
    %cst_17 = arith.constant dense<0.000000e+00> : vector<8xf32>
    %57 = vector.multi_reduction <add>, %56, %cst_17 [1] : vector<8x128xf32> to vector<8xf32>
    %58 = vector.shape_cast %57 : vector<8xf32> to vector<8x1xf32>
    %cst_18 = arith.constant 1.280000e+02 : f32
    %59 = vector.broadcast %cst_18 : f32 to vector<8x1xf32>
    %60 = arith.divf %58, %59 : vector<8x1xf32>
    %61 = vector.broadcast %53 : vector<8x1xf32> to vector<8x128xf32>
    %62 = arith.subf %49, %61 : vector<8x128xf32>
    %cst_19 = arith.constant 9.99999974E-6 : f32
    %63 = vector.broadcast %cst_19 : f32 to vector<8x1xf32>
    %64 = arith.addf %60, %63 : vector<8x1xf32>
    %65 = math.rsqrt %64 : vector<8x1xf32>
    %66 = vector.broadcast %65 : vector<8x1xf32> to vector<8x128xf32>
    %67 = arith.mulf %62, %66 : vector<8x128xf32>
    %c0_20 = arith.constant 0 : index
    %c0_21 = arith.constant 0 : index
    %68 = vector.load %arg6[%c0_20, %c0_21] : memref<1x128xf32, #tpu.memory_space<vmem>>, vector<1x128xf32>
    %69 = vector.shape_cast %68 : vector<1x128xf32> to vector<128xf32>
    %70 = vector.shape_cast %69 : vector<128xf32> to vector<1x128xf32>
    %71 = vector.broadcast %70 : vector<1x128xf32> to vector<8x128xf32>
    %72 = arith.mulf %67, %71 : vector<8x128xf32>
    %c0_22 = arith.constant 0 : index
    %c0_23 = arith.constant 0 : index
    %73 = vector.load %arg7[%c0_22, %c0_23] : memref<1x128xf32, #tpu.memory_space<vmem>>, vector<1x128xf32>
    %74 = vector.shape_cast %73 : vector<1x128xf32> to vector<128xf32>
    %75 = vector.shape_cast %74 : vector<128xf32> to vector<1x128xf32>
    %76 = vector.broadcast %75 : vector<1x128xf32> to vector<8x128xf32>
    %77 = arith.addf %72, %76 : vector<8x128xf32>
    %78 = vector.shape_cast %77 : vector<8x128xf32> to vector<1x8x128xf32>
    %c0_24 = arith.constant 0 : index
    %c0_25 = arith.constant 0 : index
    %c0_26 = arith.constant 0 : index
    %79 = vector.load %arg8[%c0_24, %c0_25, %c0_26] : memref<1x8x128xf32, #tpu.memory_space<vmem>>, vector<1x8x128xf32>
    tpu.vector_store %arg8[%c0_24, %c0_25, %c0_26], %78 {strides = array<i32>} : memref<1x8x128xf32, #tpu.memory_space<vmem>>, vector<1x8x128xf32>,
    return
  }
  func.func @transform_0(%arg0: i32) -> (i32, i32, i32) {
    %c0_i32 = arith.constant 0 : i32
    %c0_i32_0 = arith.constant 0 : i32
    %c0_i32_1 = arith.constant 0 : i32
    return %arg0, %c0_i32, %c0_i32_0 : i32, i32, i32
  }
  func.func @transform_1(%arg0: i32) -> (i32, i32) {
    %c0_i32 = arith.constant 0 : i32
    %c0_i32_0 = arith.constant 0 : i32
    %c0_i32_1 = arith.constant 0 : i32
    return %c0_i32, %c0_i32_0 : i32, i32
  }
  func.func @transform_2(%arg0: i32) -> (i32, i32) {
    %c0_i32 = arith.constant 0 : i32
    %c0_i32_0 = arith.constant 0 : i32
    %c0_i32_1 = arith.constant 0 : i32
    return %c0_i32, %c0_i32_0 : i32, i32
  }
  func.func @transform_3(%arg0: i32) -> (i32, i32) {
    %c0_i32 = arith.constant 0 : i32
    %c0_i32_0 = arith.constant 0 : i32
    %c0_i32_1 = arith.constant 0 : i32
    return %c0_i32, %c0_i32_0 : i32, i32
  }
  func.func @transform_4(%arg0: i32) -> (i32, i32) {
    %c0_i32 = arith.constant 0 : i32
    %c0_i32_0 = arith.constant 0 : i32
    %c0_i32_1 = arith.constant 0 : i32
    return %c0_i32, %c0_i32_0 : i32, i32
  }
  func.func @transform_5(%arg0: i32) -> (i32, i32) {
    %c0_i32 = arith.constant 0 : i32
    %c0_i32_0 = arith.constant 0 : i32
    %c0_i32_1 = arith.constant 0 : i32
    return %c0_i32, %c0_i32_0 : i32, i32
  }
  func.func @transform_6(%arg0: i32) -> (i32, i32) {
    %c0_i32 = arith.constant 0 : i32
    %c0_i32_0 = arith.constant 0 : i32
    %c0_i32_1 = arith.constant 0 : i32
    return %c0_i32, %c0_i32_0 : i32, i32
  }
  func.func @transform_7(%arg0: i32) -> (i32, i32, i32) {
    %c0_i32 = arith.constant 0 : i32
    %c0_i32_0 = arith.constant 0 : i32
    %c0_i32_1 = arith.constant 0 : i32
    return %arg0, %c0_i32, %c0_i32_0 : i32, i32, i32
  }
}

</mosaic_0001>

<bundles_post_ra>
// kernel: mha_block.1
= control target key start
LH: loop header
LB: loop body
LE: loop exit
PB: predicated region body
PF: predicated region fallthrough
CT: control target
= control target key end

     0   :  { %s2824_s0 = inlined_call_operand.hbm [shape: f32[2,8,128], index: 0, kind: input, shape index: {}]   ;;  %s2825_s1 = inlined_call_operand.hbm [shape: bf16[128,384], index: 1, kind: input, shape index: {}]   ;;  %s2826_s2 = inlined_call_operand.hbm [shape: f32[1,384], index: 2, kind: input, shape index: {}]   ;;  %s2827_s3 = inlined_call_operand.hbm [shape: bf16[128,128], index: 3, kind: input, shape index: {}]   ;;  %s2828_s4 = inlined_call_operand.vmem [shape: f32[1,128], index: 4, kind: input, shape index: {}]   ;;  %s2829_s5 = inlined_call_operand.vmem [shape: f32[1,128], index: 5, kind: input, shape index: {}]   ;;  %s2830_s6 = inlined_call_operand.vmem [shape: f32[1,128], index: 6, kind: input, shape index: {}]   ;;  %s2831_s7 = inlined_call_operand.hbm [shape: f32[2,8,128], index: 7, kind: output, shape index: {}]  }
   0x1   :  { %2836 = sst [smem:[#allocation15_spill]] %s2825_s1 }
   0x2   :  { %2837 = sst [smem:[#allocation16_spill]] %s2826_s2 }
   0x3   :  { %12 = vsyncpa [#allocation3], 0 }
   0x4   :  { %14 = vsyncpa [#allocation3 + $0x1], 0 }
   0x5   :  { %15 = vsyncpa [#allocation6], 0 }
   0x6   :  { %16 = vsyncpa [#allocation9], 0 }
   0x7   :  { %17 = vsyncpa [#allocation4], 0 }
   0x8   :  { %19 = vsyncpa [#allocation4 + $0x1], 0  ;;  %s2449_s24 = smov 0   ;;  %s2451_s25 = smov 0  }
   0x9   :  { %s2453_s26 = smov 0   ;;  %s2455_s27 = smov 0  }
   0xa LB: > { %s2470_s28 = sadd.s32 4294967295, %s2390_s27   ;;  %s1874_s29 = sadd.s32 4294967294, %s2390_s27   ;;  %s2390_s27 = sphi %s2455_s27, %s2859_s27   ;;  %s2386_s26 = sphi %s2453_s26, %s2858_s26   ;;  %s2382_s25 = sphi %s2451_s25, %s2857_s25   ;;  %s2378_s24 = sphi %s2449_s24, %s2856_s24  }
   0xb   : > { %p45_p0 = scmp.ne.s32.totalorder %s2382_s25, %s2378_s24  ;;  %p2832_p1 = scmp.eq.s32.totalorder %s2470_s28, 0 }
   0xc   : > { %p201_p3 = scmp.eq.s32.totalorder %s1874_s29, 1  ;;  %p1875_p5 = scmp.ge.s32.totalorder %s2390_s27, 1 }
   0xd   : > { %p2479_p4 = por %p2832_p1, %p45_p0  ;;  %p208_p7 = scmp.lt.s32.totalorder %s2390_s27, 3 }
   0xe   : > { %p2484_p6 = por %p201_p3, %p45_p0  ;;  %s2392_s10 = smov [#allocation5]  }
   0xf   : > { %s2838_s30 = scalar_select %p2479_p4, 1, 0 }
  0x10   : > { %s2839_s8 = scalar_select %p2484_p6, 1, 0 }
  0x11   : > { %p2489_p8 = pnand %p1875_p5, %p208_p7  ;;  %s220_s11 = sshll.u32 %s2392_s10, 4  ;;  %s221_s11 = int_to_ptr.vmem [resolvable:$true] %s220_s11 }
  0x12   : > { %s2393_s13 = smov [#allocation7]   ;;  %s2394_s15 = smov [#allocation8]  }
  0x13   : > { %s2840_s9 = scalar_select %p2489_p8, 1, 0 }
  0x14   : > { %p2081_p9 = pneg %p2489_p8  ;;  %s234_s14 = sshll.u32 %s2393_s13, 4  ;;  %s235_s14 = int_to_ptr.vmem [resolvable:$true] %s234_s14 }
  0x15   : > { %s244_s16 = sshll.u32 %s2394_s15, 4  ;;  %s2223_s17 = scalar_lea.vmem %s221_s11, 3072  ;;  %s245_s16 = int_to_ptr.vmem [resolvable:$true] %s244_s16 }
  0x16   : > { %p2498_p11 = pnand %p2081_p9, %p2832_p1  ;;  %p2224_p13 = scmp.ne.s32.totalorder %s221_s11, %s2223_s17 }
  0x17   : > { %p2231_p5 = scmp.lt.s32.totalorder %s221_s11, %s221_s11  ;;  %p2232_p7 = scmp.lt.s32.totalorder %s2223_s17, %s2223_s17 }
  0x18   : > { %p2214_p12 = pneg %p2498_p11 }
  0x19   : > { %p2233_p9 = por %p2232_p7, %p2231_p5 }
  0x1a   : > { %p2226_p0 = pnand %p2224_p13, %p2214_p12 }
  0x1c   : > { %p2227_p3 = pneg %p2226_p0 }
  0x1e   : > { %p2234_p10 = pnand %p2233_p9, %p2227_p3 }
  0x20   : > { %2237 = shalt.err (!%p2234_p10)
}
  0x21   : > { %s2395_s18 = smov 192   ;;  %s2396_s19 = smov 12  }
  0x22   : > { %s2842_s1 = sld [smem:[#allocation15_spill]]  ;;  %s2249_s22 = scalar_lea.vmem %s235_s14, 48 }
  0x23   : > { %p2250_p1 = scmp.ne.s32.totalorder %s235_s14, %s2249_s22  ;;  %s2256_s23 = scalar_lea.vmem %s235_s14, 64 }
  0x24   : > { %p2257_p2 = scmp.lt.s32.totalorder %s235_s14, %s235_s14  ;;  %p2258_p5 = scmp.lt.s32.totalorder %s2256_s23, %s2249_s22 }
  0x25   : > { %p2252_p13 = pnand %p2250_p1, %p2214_p12 }
  0x26   : > { %p2259_p3 = por %p2258_p5, %p2257_p2 }
  0x27   : > { %p2253_p0 = pneg %p2252_p13 }
  0x28   : > { %2084 = dma.hbm_to_vmem [thread:$0]  (!%p2498_p11), %s2842_s1, 3072, %s221_s11, [#allocation6], %s2395_s18, %s2395_s18, %s2396_s19  }
  0x29   : > { %p2260_p10 = pnand %p2259_p3, %p2253_p0 }
  0x2b   : > { %2263 = shalt.err (!%p2260_p10)
}
  0x2c   : > { %s2843_s2 = sld [smem:[#allocation16_spill]]  ;;  %s2275_s11 = scalar_lea.vmem %s245_s16, 1024 }
  0x2d   : > { %p2276_p7 = scmp.ne.s32.totalorder %s245_s16, %s2275_s11  ;;  %p2283_p13 = scmp.lt.s32.totalorder %s245_s16, %s245_s16 }
  0x2e   : > { %p2284_p6 = scmp.lt.s32.totalorder %s2275_s11, %s2275_s11 }
  0x2f   : > { %p2278_p1 = pnand %p2276_p7, %p2214_p12 }
  0x30   : > { %p2285_p4 = por %p2284_p6, %p2283_p13 }
  0x31   : > { %p2279_p9 = pneg %p2278_p1 }
  0x32   : > { %2087 = dma.hbm_to_vmem [thread:$0]  (!%p2498_p11), %s2843_s2, 48, %s235_s14, [#allocation6]  }
  0x33   : > { %p2286_p2 = pnand %p2285_p4, %p2279_p9 }
  0x35   : > { %2289 = shalt.err (!%p2286_p2)
}
  0x36   : > { %s2397_s13 = smov 64   ;;  %s2398_s14 = smov 4  }
  0x37   : > { %2090 = dma.hbm_to_vmem [thread:$0]  (!%p2498_p11), %s2827_s3, 1024, %s245_s16, [#allocation9], %s2397_s13, %s2397_s13, %s2398_s14  }
  0x38   : > { %s2529_s18 = sadd.s32 1, %s2390_s27   ;;  %s32_s20 = sadd.s32 1, %s2386_s26 }
  0x39   : > { %s29_s19 = ssub.s32 %s2390_s27, %s2529_s18  ;;  %p39_p6 = scmp.ne.s32.totalorder %s2386_s26, %s2382_s25 }
  0x3a   : > { %p30_p4 = scmp.eq.s32.totalorder %s29_s19, 0  ;;  %p40_p12 = scmp.eq.s32.totalorder %s2390_s27, 0 }
  0x3b   : > { %p2102_p0 = scmp.lt.s32.totalorder %s2390_s27, 2  ;;  %p2844_p3 = scmp.eq.s32.totalorder %s2470_s28, 1 }
  0x3c   : > { %s2539_s21 = scalar_select %p30_p4, %s2386_s26, %s32_s20  }
  0x3d   : > { %p41_p5 = por %p40_p12, %p39_p6  ;;  %p2543_p10 = por %p2844_p3, %p39_p6 }
  0x3e   : > { %s267_s12 = sand.u32 1, %s2386_s26   ;;  %s1881_s23 = sshll.u32 %s2390_s27, 7 }
  0x3f   : > { %s2845_s22 = scalar_select %p2543_p10, 1, 0 }
  0x40   : > { %s1880_s16 = sshll.u32 %s267_s12, 3  ;;  %s2552_s11 = scalar_lea.hbm %s2824_s0, %s1881_s23 }
  0x41   : > { %s271_s13 = scalar_lea.vmem [#allocation2], %s1880_s16  ;;  %p2554_p11 = pnand %p2102_p0, %p41_p5 }
  0x42   : > { %s278_s14 = sshll.u32 %s271_s13, 4  ;;  %s268_s17 = scalar_lea.sflag [#allocation3], %s267_s12  ;;  %s279_s14 = int_to_ptr.vmem [resolvable:$true] %s278_s14 }
  0x43   : > { %s2290_s19 = scalar_lea.hbm %s2552_s11, 128  ;;  %p2292_p1 = pneg %p2554_p11 }
  0x44   : > { %p2291_p7 = scmp.ne.s32.totalorder %s2552_s11, %s2290_s19  ;;  %s2295_s29 = scalar_lea.hbm %s2824_s0, 256 }
  0x45   : > { %p2296_p2 = scmp.lt.s32.totalorder %s2552_s11, %s2824_s0  ;;  %p2297_p4 = scmp.lt.s32.totalorder %s2295_s29, %s2290_s19 }
  0x46   : > { %p2293_p9 = pnand %p2292_p1, %p2291_p7 }
  0x47   : > { %p2298_p6 = por %p2297_p4, %p2296_p2 }
  0x48   : > { %p2294_p13 = pneg %p2293_p9 }
  0x4a   : > { %p2299_p12 = pnand %p2298_p6, %p2294_p13 }
  0x4c   : > { %2302 = shalt.err (!%p2299_p12)
}
  0x4d   : > { %s2303_s13 = scalar_lea.vmem %s279_s14, 128  ;;  %s2399_s12 = smov [#allocation2]  }
  0x4e   : > { %p2304_p0 = scmp.ne.s32.totalorder %s279_s14, %s2303_s13  ;;  %s2308_s1 = sshll.u32 %s2399_s12, 4  ;;  %s2309_s1 = int_to_ptr.vmem [resolvable:$false] %s2308_s1 }
  0x4f   : > { %s2310_s2 = scalar_lea.vmem %s2309_s1, 256  ;;  %p2311_p7 = scmp.lt.s32.totalorder %s279_s14, %s2309_s1 }
  0x50   : > { %p2306_p5 = pnand %p2304_p0, %p2292_p1  ;;  %p2312_p9 = scmp.lt.s32.totalorder %s2310_s2, %s2303_s13 }
  0x52   : > { %p2307_p3 = pneg %p2306_p5  ;;  %p2313_p10 = por %p2312_p9, %p2311_p7 }
  0x54   : > { %p2314_p8 = pnand %p2313_p10, %p2307_p3 }
  0x56   : > { %2317 = shalt.err (!%p2314_p8)
}
  0x57   : > { %2094 = dma.hbm_to_vmem [thread:$0]  (!%p2554_p11), %s2552_s11, 128, %s279_s14, %s268_s17  }
  0x58   : > { %p2847_p13 = scmp.ne.s32.totalorder %s2840_s9, 0 }
  0x59   : > { %s2575_s19 = sand.u32 (!%p2847_p13), 1, %s2382_s25   ;;  %p2848_p8 = scmp.ne.s32.totalorder (!%p2847_p13), %s2838_s30, 0 }
  0x5a   : > { %287 = sbr.rel (%p2847_p13) target bundleno = 1896 (0x768), region = 48  ;;  %s1883_s20 = sshll.u32 (!%p2847_p13), %s2575_s19, 3 }
  0x5b   : > { %s290_s1 = scalar_lea.sflag (!%p2847_p13), [#allocation3], %s2575_s19  ;;  %s2581_s2 = scalar_lea.vmem (!%p2847_p13), [#allocation2], %s1883_s20 }
  0x5f   : > { %2361 = dma.done.wait (%p2848_p8), %s290_s1, 128  }
  0x60   : > { %2363 = vsyncadd (%p2848_p8), %s290_s1, 4294967168  ;;  %p2849_p10 = scmp.eq.s32.totalorder %s2470_s28, 0 }
  0x62   : > { %2365 = dma.done.wait (%p2849_p10), [#allocation6], 3120   ;;  %p2850_p11 = pmov %p2849_p10 }
  0x63   : > { %p2851_p1 = pmov %p2849_p10 }
  0x64   : > { %2367 = vsyncadd (%p2850_p11), [#allocation6], 4294964176 }
  0x65   : > { %2369 = dma.done.wait (%p2851_p1), [#allocation9], 1024   ;;  %p2852_p2 = pmov %p2851_p1 }
  0x66   : > { %v2400_v0 = vmov 0   ;;  %v2154_v1 = vld [vmem:[#allocation5 + $0xac] ss:$12 sps:$4 sm:$0xff]   ;;  %v2156_v2 = vld [vmem:[#allocation5 + $0xa8] ss:$12 sps:$4 sm:$0xff]   ;;  %v2401_v20 = vmov 0.0   ;;  %v373_v23 = vlaneseq }
  0x67   : > { %2371 = vsyncadd (%p2852_p2), [#allocation9], 4294966272  ;;  %548 = vmatprep.mubr.bf16.mxu0 %v2400_v0  ;;  %516 = vmatprep.subr.bf16.mxu0 %v2154_v1  ;;  %v2157_v3 = vld [vmem:[#allocation5 + $0x94] ss:$12 sps:$4 sm:$0xff]   ;;  %v2159_v4 = vld [vmem:[#allocation5 + $0x90] ss:$12 sps:$4 sm:$0xff]  }
  0x68   : > { %517 = vmatpush1.bf16.msra.mxu0 %v2156_v2  ;;  %v2160_v5 = vld [vmem:[#allocation5 + $0x7c] ss:$12 sps:$4 sm:$0xff]   ;;  %v2162_v6 = vld [vmem:[#allocation5 + $0x78] ss:$12 sps:$4 sm:$0xff]   ;;  %v2165_v8 = vld [vmem:[#allocation5 + $0x60] ss:$12 sps:$4 sm:$0xff]   ;;  %1977 = vmatprep.subr.bf16.mxu1 %v2401_v20 }
  0x69   : > { %518 = vmatprep.subr.bf16.mxu0 %v2157_v3  ;;  %v2163_v7 = vld [vmem:[#allocation5 + $0x64] ss:$12 sps:$4 sm:$0xff]   ;;  %v2166_v9 = vld [vmem:[#allocation5 + $0x4c] ss:$12 sps:$4 sm:$0xff]   ;;  %v2168_v10 = vld [vmem:[#allocation5 + $0x48] ss:$12 sps:$4 sm:$0xff]  }
  0x6a   : > { %v2169_v11 = vld [vmem:[#allocation5 + $0x34] ss:$12 sps:$4 sm:$0xff]   ;;  %v2171_v12 = vld [vmem:[#allocation5 + $0x30] ss:$12 sps:$4 sm:$0xff]   ;;  %v2174_v14 = vld [vmem:[#allocation5 + $0x18] ss:$12 sps:$4 sm:$0xff]  }
  0x6b   : > { %v2172_v13 = vld [vmem:[#allocation5 + $0x1c] ss:$12 sps:$4 sm:$0xff]   ;;  %v2175_v15 = vld [vmem:[#allocation5 + $0x4] ss:$12 sps:$4 sm:$0xff]   ;;  %v2177_v16 = vld [vmem:[#allocation5] ss:$12 sps:$4 sm:$0xff]  }
  0x6c   : > { %519 = vmatpush1.bf16.msra.mxu0 %v2159_v4  ;;  %v2596_v17 = vld [vmem:[%s2581_s2] sm:$0xff]  ;;  %v2180_v22 = vld [vmem:[#allocation5 + $0x80] ss:$12 sps:$4 sm:$0xff]   ;;  %v2606_v25 = vshrl.u32 %v373_v23, 7  ;;  %s2402_s30 = smov 32   ;;  %s2403_s9 = smov 96  }
  0x6d   : > { %520 = vmatprep.subr.bf16.mxu0 %v2160_v5  ;;  %v338_v18 = vpack.c.bf16 %v2596_v17, %v2596_v17  ;;  %v2178_v19 = vld [vmem:[#allocation5 + $0xb0] ss:$12 sps:$4 sm:$0xff]   ;;  %v2179_v21 = vld [vmem:[#allocation5 + $0x98] ss:$12 sps:$4 sm:$0xff]   ;;  %v2181_v24 = vld [vmem:[#allocation5 + $0x68] ss:$12 sps:$4 sm:$0xff]  }
  0x6e   : > { %1978 = vmatpush3.bf16.msra.mxu1 %v2178_v19  ;;  %v2182_v26 = vld [vmem:[#allocation5 + $0x50] ss:$12 sps:$4 sm:$0xff]   ;;  %v379_v27 = vsub.s32 1, %v2606_v25  ;;  %v2610_v28 = vld [vmem:[#allocation7] sm:$0x7]  ;;  %v375_v30 = vsub.s32 0, %v2606_v25 }
  0x6f   : > { %1979 = vmatprep.subr.bf16.mxu1 %v2401_v20  ;;  %v2183_v29 = vld [vmem:[#allocation5 + $0x38] ss:$12 sps:$4 sm:$0xff]   ;;  %v2184_v34 = vld [vmem:[#allocation5 + $0x20] ss:$12 sps:$4 sm:$0xff]   ;;  %v2185_v39 = vld [vmem:[#allocation5 + $0x8] ss:$12 sps:$4 sm:$0xff]  }
  0x70   : > { %521 = vmatpush1.bf16.msra.mxu0 %v2162_v6  ;;  %v380_v31 = vrot.slane %v2610_v28, %v379_v27  ;;  %v376_v35 = vrot.slane %v2610_v28, %v375_v30  ;;  %s2404_s11 = smov 64   ;;  %vm2405_vm0 = vmmov 0   ;;  %v2406_v41 = vmov 1983009808   ;;  %s1940_s16 = sshll.u32 %s2470_s28, 7 }
  0x71   : > { %522 = vmatprep.subr.bf16.mxu0 %v2163_v7  ;;  %1993 = vmatprep.mubr.msk.bf16.mxu1 %vm2405_vm0, %v2401_v20  ;;  %v610_v42 = vunpack.c.l.s4 %v2406_v41  ;;  %v2407_v43 = vmov 1934713408   ;;  %vm1047_vm1 = vcmask 261120   ;;  %vm1232_vm2 = vcmask 64512   ;;  %s335_s13 = scalar_lea.vmem [#allocation10], %s1883_s20  ;;  %p2853_p6 = scmp.ne.s32.totalorder %s2845_s22, 0 }
  0x72   : > { %1980 = vmatpush3.bf16.msra.mxu1 %v2179_v21  ;;  %v642_v44 = vunpack.c.l.s4 %v2407_v43  ;;  %vm1284_vm3 = vcmask 1043456   ;;  %vm1615_vm4 = vcmask 523264   ;;  %vm1617_vm5 = vcmask 785408   ;;  %s1775_s12 = sshll.u32 %s335_s13, 4  ;;  %s2408_s14 = smov [#allocation10]   ;;  %s1776_s12 = int_to_ptr.vmem [resolvable:$true] %s1775_s12 }
  0x73   : > { %1981 = vmatprep.subr.bf16.mxu1 %v2401_v20  ;;  %v611_v45 = vunpack.c.0.s8 %v610_v42  ;;  %s2322_s15 = sshll.u32 %s2408_s14, 4  ;;  %s2323_s15 = int_to_ptr.vmem [resolvable:$false] %s2322_s15 }
  0x74   : > { %523 = vmatpush1.bf16.msra.mxu0 %v2165_v8  ;;  %v643_v48 = vunpack.c.0.s8 %v642_v44  ;;  %s2324_s28 = scalar_lea.vmem %s2323_s15, 256  ;;  %p2325_p5 = scmp.lt.s32.totalorder %s1776_s12, %s2323_s15 }
  0x75   : > { %524 = vmatprep.subr.bf16.mxu0 %v2166_v9  ;;  %v2631_v49 = vsub.s32 %v611_v45, %v2606_v25 }
  0x76   : > { %1982 = vmatpush3.bf16.msra.mxu1 %v2180_v22  ;;  %v2634_v56 = vsub.s32 %v643_v48, %v2606_v25 }
  0x77   : > { %1983 = vmatprep.subr.bf16.mxu1 %v2401_v20 }
  0x78   : > { %525 = vmatpush1.bf16.msra.mxu0 %v2168_v10 }
  0x79   : > { %526 = vmatprep.subr.bf16.mxu0 %v2169_v11 }
  0x7a   : > { %1984 = vmatpush3.bf16.msra.mxu1 %v2181_v24 }
  0x7b   : > { %1985 = vmatprep.subr.bf16.mxu1 %v2401_v20 }
  0x7c   : > { %527 = vmatpush1.bf16.msra.mxu0 %v2171_v12 }
  0x7d   : > { %528 = vmatprep.subr.bf16.mxu0 %v2172_v13 }
  0x7e   : > { %1986 = vmatpush3.bf16.msra.mxu1 %v2182_v26 }
  0x7f   : > { %1987 = vmatprep.subr.bf16.mxu1 %v2401_v20 }
  0x80   : > { %529 = vmatpush1.bf16.msra.mxu0 %v2174_v14 }
  0x81   : > { %530 = vmatprep.subr.bf16.mxu0 %v2175_v15 }
  0x82   : > { %1988 = vmatpush3.bf16.msra.mxu1 %v2183_v29 }
  0x83   : > { %1989 = vmatprep.subr.bf16.mxu1 %v2401_v20 }
  0x84   : > { %531 = vmatpush1.bf16.msra.mxu0 %v2177_v16 }
  0x85   : > { %2021 = vmatprep.subr.bf16.mxu0 %v2401_v20 }
  0x86   : > { %1990 = vmatpush3.bf16.msra.mxu1 %v2184_v34 }
  0x87   : > { %549 = vmatmul.mubr.bf16.vlgmr.msra.gmra.mxu0 %v338_v18  ;;  %1991 = vmatprep.subr.bf16.mxu1 %v2401_v20 }
  0x88   : > { %2023 = vmatprep.mubr.msk.bf16.mxu0 %vm2405_vm0, %v2401_v20 }
  0x8a   : > { %1992 = vmatpush3.bf16.msra.mxu1 %v2185_v39 }
  0x8b   : > { %1997 = vmatprep.subr.bf16.mxu1 %v2401_v20 }
  0x8d   : > { %1994 = vmatmul.mubr.bf16.vlgmr.msra.gmra.mxu1 %v338_v18 }
  0x8e   : > { %1999 = vmatprep.mubr.msk.bf16.mxu1 %vm2405_vm0, %v2401_v20 }
 0x147   : > { %v550_v32 = vpop.f32.mrf.mxu0 }
 0x148   : > { %v551_v40 = vadd.f32 %v550_v32, %v376_v35 }
 0x149   : > { %v552_v33 = vpop.f32.mrf.mxu0 }
 0x14a   : > { %v553_v36 = vadd.f32 %v552_v33, %v380_v31 }
 0x14b   : > { %v554_v37 = vpop.f32.mrf.mxu0 }
 0x14c   : > { %754 = vrot.lane.b32.xlu1 %v553_v36, %s2402_s30  ;;  %748 = vrot.lane.b32.xlu0 %v553_v36, %s2403_s9 }
 0x14d   : > { %v555_v38 = vpop.f32.mrf.mxu0 }
 0x150   : > { %751 = vrot.lane.b32.xlu0 %v553_v36, %s2404_s11  ;;  %598 = vrot.lane.b32.xlu1 %v551_v40, %s2403_s9 }
 0x154   : > { %601 = vrot.lane.b32.xlu0 %v551_v40, %s2404_s11  ;;  %604 = vrot.lane.b32.xlu1 %v551_v40, %s2402_s30 }
 0x1be   : > { %v755_v46 = vpop.permute.xlu1 %754  ;;  %v749_v47 = vpop.permute.xlu0 %748 }
 0x1bf   : > { %v773_v50 = vcombine.low %v749_v47, %v755_v46  ;;  %v774_v51 = vcombine.high %v749_v47, %v755_v46 }
 0x1c1   : > { %v781_v57 = vrot.slane %v773_v50, %v2631_v49  ;;  %v788_v58 = vrot.slane %v774_v51, %v2631_v49 }
 0x1c2   : > { %v752_v52 = vpop.permute.xlu0 %751  ;;  %v599_v53 = vpop.permute.xlu1 %598 }
 0x1c3   : > { %v757_v54 = vcombine.low %v553_v36, %v752_v52  ;;  %v758_v55 = vcombine.high %v553_v36, %v752_v52 }
 0x1c5   : > { %v765_v59 = vrot.slane %v757_v54, %v2631_v49  ;;  %v772_v60 = vrot.slane %v758_v55, %v2631_v49 }
 0x1c6   : > { %v602_v61 = vpop.permute.xlu0 %601  ;;  %v605_v62 = vpop.permute.xlu1 %604 }
 0x1c7   : > { %v789_v63 = vcombine.low %v765_v59, %v781_v57  ;;  %v790_v0 = vcombine.high %v765_v59, %v781_v57  ;;  %v805_v1 = vcombine.low %v772_v60, %v788_v58  ;;  %v806_v2 = vcombine.high %v772_v60, %v788_v58 }
 0x1c8   : > { %v607_v3 = vcombine.low %v551_v40, %v602_v61  ;;  %v608_v4 = vcombine.high %v551_v40, %v602_v61  ;;  %v623_v5 = vcombine.low %v599_v53, %v605_v62  ;;  %v624_v6 = vcombine.high %v599_v53, %v605_v62 }
 0x1c9   : > { %v797_v7 = vrot.slane %v789_v63, %v2634_v56  ;;  %v804_v8 = vrot.slane %v790_v0, %v2634_v56  ;;  %v813_v9 = vrot.slane %v805_v1, %v2634_v56  ;;  %v820_v10 = vrot.slane %v806_v2, %v2634_v56 }
 0x1ca   : > { %v615_v11 = vrot.slane %v607_v3, %v2631_v49  ;;  %v622_v12 = vrot.slane %v608_v4, %v2631_v49  ;;  %v631_v13 = vrot.slane %v623_v5, %v2631_v49  ;;  %v638_v14 = vrot.slane %v624_v6, %v2631_v49 }
 0x1cb   : > { %v825_v15 = vcombine.low %v797_v7, %v804_v8  ;;  %v1914_v16 = vcombine.high %v797_v7, %v804_v8  ;;  %v841_v18 = vcombine.low %v813_v9, %v820_v10  ;;  %v1915_v19 = vcombine.high %v813_v9, %v820_v10 }
 0x1cc   : > { %v639_v21 = vcombine.low %v615_v11, %v631_v13  ;;  %v640_v22 = vcombine.high %v615_v11, %v631_v13  ;;  %v655_v23 = vcombine.low %v622_v12, %v638_v14  ;;  %v656_v24 = vcombine.high %v622_v12, %v638_v14 }
 0x1cd   : > { %v832_v26 = vrot.slane %v825_v15, %v2631_v49  ;;  %v840_v27 = vrot.slane %v1914_v16, %v2631_v49  ;;  %v848_v29 = vrot.slane %v841_v18, %v2631_v49  ;;  %v856_v30 = vrot.slane %v1915_v19, %v2631_v49  ;;  %v591_v18 = vpop.f32.mrf.mxu1 }
 0x1ce   : > { %v647_v31 = vrot.slane %v639_v21, %v2634_v56  ;;  %v654_v32 = vrot.slane %v640_v22, %v2634_v56  ;;  %v663_v33 = vrot.slane %v655_v23, %v2634_v56  ;;  %v670_v34 = vrot.slane %v656_v24, %v2634_v56 }
 0x1cf   : > { %v857_v35 = vcombine.low %v832_v26, %v840_v27  ;;  %v873_v36 = vcombine.low %v848_v29, %v856_v30  ;;  %v858_v57 = vcombine.high %v832_v26, %v840_v27  ;;  %v874_v58 = vcombine.high %v848_v29, %v856_v30  ;;  %v1995_v19 = vpop.f32.mrf.mxu1 }
 0x1d0   : > { %v675_v37 = vcombine.low %v647_v31, %v654_v32  ;;  %v1912_v38 = vcombine.high %v647_v31, %v654_v32  ;;  %v691_v39 = vcombine.low %v663_v33, %v670_v34  ;;  %v1913_v40 = vcombine.high %v663_v33, %v670_v34 }
 0x1d1   : > { %v865_v41 = vrot.slane %v857_v35, %v2634_v56  ;;  %v881_v42 = vrot.slane %v873_v36, %v2634_v56  ;;  %v872_v61 = vrot.slane %v858_v57, %v2634_v56  ;;  %v888_v62 = vrot.slane %v874_v58, %v2634_v56  ;;  %v594_v21 = vpop.f32.mrf.mxu1 }
 0x1d2   : > { %v682_v43 = vrot.slane %v675_v37, %v2631_v49  ;;  %v690_v44 = vrot.slane %v1912_v38, %v2631_v49  ;;  %v698_v45 = vrot.slane %v691_v39, %v2631_v49  ;;  %v706_v46 = vrot.slane %v1913_v40, %v2631_v49 }
 0x1d3   : > { %v889_v47 = vcombine.low %v865_v41, %v881_v42  ;;  %v890_v55 = vcombine.high %v865_v41, %v881_v42  ;;  %v891_v1 = vcombine.low %v872_v61, %v888_v62  ;;  %v892_v10 = vcombine.high %v872_v61, %v888_v62  ;;  %v1996_v22 = vpop.f32.mrf.mxu1 }
 0x1d4   : > { %v707_v48 = vcombine.low %v682_v43, %v690_v44  ;;  %v723_v50 = vcombine.low %v698_v45, %v706_v46  ;;  %v708_v2 = vcombine.high %v682_v43, %v690_v44  ;;  %v724_v3 = vcombine.high %v698_v45, %v706_v46 }
 0x1d5   : > { %v893_v51 = vpack.c.bf16 %v889_v47, %v889_v47  ;;  %v894_v60 = vpack.c.bf16 %v890_v55, %v890_v55  ;;  %v895_v5 = vpack.c.bf16 %v891_v1, %v891_v1  ;;  %v896_v12 = vpack.c.bf16 %v892_v10, %v892_v10 }
 0x1d6   : > { %v715_v52 = vrot.slane %v707_v48, %v2634_v56  ;;  %v731_v53 = vrot.slane %v723_v50, %v2634_v56  ;;  %v722_v7 = vrot.slane %v708_v2, %v2634_v56  ;;  %v738_v8 = vrot.slane %v724_v3, %v2634_v56 }
 0x1d7   : > { %v1052_v54 = vsel %vm1047_vm1, %v893_v51, 0  ;;  %v1098_v0 = vsel %vm1047_vm1, %v894_v60, 0  ;;  %v1144_v9 = vsel %vm1047_vm1, %v895_v5, 0  ;;  %v1190_v14 = vsel %vm1047_vm1, %v896_v12, 0 }
 0x1d8   : > { %1998 = vmatpush3.bf16.xpose.msra.mxu1 %v1052_v54  ;;  %v739_v59 = vcombine.low %v715_v52, %v731_v53  ;;  %v740_v4 = vcombine.high %v715_v52, %v731_v53  ;;  %v741_v11 = vcombine.low %v722_v7, %v738_v8  ;;  %v742_v15 = vcombine.high %v722_v7, %v738_v8 }
 0x1d9   : > { %2003 = vmatprep.subr.bf16.mxu1 %v2401_v20  ;;  %v383_v36 = vsub.s32 2, %v2606_v25 }
 0x1da   : > { %v743_v63 = vpack.c.bf16 %v739_v59, %v739_v59  ;;  %v744_v6 = vpack.c.bf16 %v740_v4, %v740_v4  ;;  %v745_v13 = vpack.c.bf16 %v741_v11, %v741_v11  ;;  %v746_v16 = vpack.c.bf16 %v742_v15, %v742_v15 }
 0x1db   : > { %v384_v40 = vrot.slane %v2610_v28, %v383_v36 }
 0x1dd   : > { %v592_v43 = vadd.f32 %v591_v18, %v384_v40 }
 0x1df   : > { %2000 = vmatmul.mubr.msk.bf16.vlgmr.msra.gmra.mxu1 %vm1047_vm1, %v743_v63 }
 0x1e0   : > { %2004 = vmatpush3.bf16.xpose.msra.mxu1 %v1098_v0  ;;  %2005 = vmatprep.mubr.msk.bf16.mxu1 %vm2405_vm0, %v2401_v20 }
 0x1e1   : > { %2009 = vmatprep.subr.bf16.mxu1 %v2401_v20 }
 0x1e7   : > { %2006 = vmatmul.mubr.msk.bf16.vlgmr.msra.gmra.mxu1 %vm1047_vm1, %v744_v6 }
 0x1e8   : > { %2010 = vmatpush3.bf16.xpose.msra.mxu1 %v1144_v9  ;;  %2011 = vmatprep.mubr.msk.bf16.mxu1 %vm2405_vm0, %v2401_v20 }
 0x1e9   : > { %2015 = vmatprep.subr.bf16.mxu1 %v2401_v20 }
 0x1ef   : > { %2012 = vmatmul.mubr.msk.bf16.vlgmr.msra.gmra.mxu1 %vm1047_vm1, %v745_v13 }
 0x1f0   : > { %2016 = vmatpush3.bf16.xpose.msra.mxu1 %v1190_v14  ;;  %2017 = vmatprep.mubr.msk.bf16.mxu1 %vm2405_vm0, %v2401_v20 }
 0x1f1   : > { %2027 = vmatprep.subr.bf16.mxu1 %v2401_v20 }
 0x1f7   : > { %2018 = vmatmul.mubr.msk.bf16.vlgmr.msra.gmra.mxu1 %vm1047_vm1, %v746_v16 }
 0x1f8   : > { %2029 = vmatprep.mubr.msk.bf16.mxu1 %vm2405_vm0, %v2401_v20 }
 0x29f   : > { %v1088_v23 = vpop.f32.mrf.mxu1 }
 0x2a0   : > { %v1233_v24 = vsel %vm1232_vm2, %v1088_v23, -inf }
 0x2a1   : > { %1234 = vmax.xlane.f32.xlu0 %v1233_v24  ;;  %v2001_v26 = vpop.f32.mrf.mxu1 }
 0x2a3   : > { %v1091_v27 = vpop.f32.mrf.mxu1 }
 0x2a5   : > { %v2002_v29 = vpop.f32.mrf.mxu1 }
 0x2a7   : > { %v1134_v30 = vpop.f32.mrf.mxu1 }
 0x2a8   : > { %v1236_v31 = vsel %vm1232_vm2, %v1134_v30, -inf }
 0x2a9   : > { %1237 = vmax.xlane.f32.xlu1 %v1236_v31  ;;  %v2007_v32 = vpop.f32.mrf.mxu1 }
 0x2ab   : > { %v1137_v33 = vpop.f32.mrf.mxu1 }
 0x2ad   : > { %v2008_v34 = vpop.f32.mrf.mxu1 }
 0x2af   : > { %v1180_v35 = vpop.f32.mrf.mxu1 }
 0x2b0   : > { %v1239_v37 = vsel %vm1232_vm2, %v1180_v35, -inf }
 0x2b1   : > { %1240 = vmax.xlane.f32.xlu0 %v1239_v37  ;;  %v2013_v38 = vpop.f32.mrf.mxu1 }
 0x2b3   : > { %v1183_v39 = vpop.f32.mrf.mxu1 }
 0x2b5   : > { %v2014_v41 = vpop.f32.mrf.mxu1 }
 0x2b7   : > { %v1226_v42 = vpop.f32.mrf.mxu1 }
 0x2b8   : > { %v1242_v44 = vsel %vm1232_vm2, %v1226_v42, -inf }
 0x2b9   : > { %1243 = vmax.xlane.f32.xlu0 %v1242_v44  ;;  %v2019_v45 = vpop.f32.mrf.mxu1 }
 0x2ba   : > { %898 = vrot.lane.b32.xlu1 %v592_v43, %s2403_s9 }
 0x2bb   : > { %v1229_v46 = vpop.f32.mrf.mxu1 }
 0x2bd   : > { %v2020_v47 = vpop.f32.mrf.mxu1 }
 0x32a   : > { %v1235_v48 = vpop.xlane.xlu0 %1234 }
 0x32b   : > { %v1245_v25 = vsub.f32 %v1088_v23, %v1235_v48 }
 0x32d   : > { %v1249_v50 = vmul.f32 1.442695, %v1245_v25 }
 0x32f   : > { %2194 = vpow2.f32 %v1249_v50 }
 0x332   : > { %v1238_v51 = vpop.xlane.xlu1 %1237 }
 0x333   : > { %v1246_v52 = vsub.f32 %v1134_v30, %v1238_v51 }
 0x335   : > { %v1251_v53 = vmul.f32 1.442695, %v1246_v52 }
 0x336   : > { %v899_v4 = vpop.permute.xlu1 %898 }
 0x337   : > { %2196 = vpow2.f32 %v1251_v53 }
 0x33a   : > { %v1241_v58 = vpop.xlane.xlu0 %1240 }
 0x33b   : > { %v1247_v59 = vsub.f32 %v1180_v35, %v1241_v58 }
 0x33c   : > { %v2695_v28 = vpop.eup %2194 }
 0x33d   : > { %v1257_v54 = vsel %vm1232_vm2, %v2695_v28, 0.0  ;;  %v1253_v60 = vmul.f32 1.442695, %v1247_v59 }
 0x33e   : > { %1258 = vadd.xlane.f32.xlu1 %v1257_v54 }
 0x33f   : > { %2198 = vpow2.f32 %v1253_v60 }
 0x342   : > { %v1244_v61 = vpop.xlane.xlu0 %1243 }
 0x343   : > { %v1248_v62 = vsub.f32 %v1226_v42, %v1244_v61 }
 0x344   : > { %v2699_v55 = vpop.eup %2196 }
 0x345   : > { %v1260_v57 = vsel %vm1232_vm2, %v2699_v55, 0.0  ;;  %v1255_v63 = vmul.f32 1.442695, %v1248_v62 }
 0x346   : > { %1261 = vadd.xlane.f32.xlu0 %v1260_v57 }
 0x347   : > { %2200 = vpow2.f32 %v1255_v63 }
 0x34c   : > { %v2705_v0 = vpop.eup %2198 }
 0x34d   : > { %v1263_v1 = vsel %vm1232_vm2, %v2705_v0, 0.0 }
 0x34f   : > { %904 = vrot.lane.b32.xlu1 %v592_v43, %s2402_s30 }
 0x354   : > { %v2709_v2 = vpop.eup %2200 }
 0x355   : > { %v1266_v3 = vsel %vm1232_vm2, %v2709_v2, 0.0 }
 0x35c   : > { %901 = vrot.lane.b32.xlu0 %v592_v43, %s2404_s11 }
 0x373   : > { %1264 = vadd.xlane.f32.xlu1 %v1263_v1 }
 0x37b   : > { %1267 = vadd.xlane.f32.xlu0 %v1266_v3 }
 0x3c7   : > { %v1259_v5 = vpop.xlane.xlu1 %1258 }
 0x3c8   : > { %2202 = vrcp.f32 %v1259_v5 }
 0x3cb   : > { %v905_v6 = vpop.permute.xlu1 %904 }
 0x3cc   : > { %v923_v8 = vcombine.low %v899_v4, %v905_v6  ;;  %v924_v9 = vcombine.high %v899_v4, %v905_v6 }
 0x3ce   : > { %v931_v13 = vrot.slane %v923_v8, %v2631_v49  ;;  %v938_v14 = vrot.slane %v924_v9, %v2631_v49  ;;  %v2186_v9 = vld [vmem:[#allocation8 + $0x38] sm:$0xff]  }
 0x3cf   : > { %v1262_v7 = vpop.xlane.xlu0 %1261 }
 0x3d0   : > { %2204 = vrcp.f32 %v1262_v7 }
 0x3d3   : > { %v902_v10 = vpop.permute.xlu0 %901 }
 0x3d4   : > { %v907_v11 = vcombine.low %v592_v43, %v902_v10  ;;  %v908_v12 = vcombine.high %v592_v43, %v902_v10  ;;  %v2187_v10 = vld [vmem:[#allocation8 + $0x30] sm:$0xff]  }
 0x3d5   : > { %v2203_v41 = vpop.eup %2202 }
 0x3d6   : > { %v915_v15 = vrot.slane %v907_v11, %v2631_v49  ;;  %v922_v16 = vrot.slane %v908_v12, %v2631_v49  ;;  %v1273_v53 = vmul.f32 %v2203_v41, %v2695_v28  ;;  %v2188_v11 = vld [vmem:[#allocation8 + $0x28] sm:$0xff]   ;;  %v2190_v12 = vld [vmem:[#allocation8 + $0x18] sm:$0xff]  }
 0x3d8   : > { %v939_v18 = vcombine.low %v915_v15, %v931_v13  ;;  %v940_v19 = vcombine.high %v915_v15, %v931_v13  ;;  %v955_v21 = vcombine.low %v922_v16, %v938_v14  ;;  %v956_v22 = vcombine.high %v922_v16, %v938_v14 }
 0x3d9   : > { %v1277_v61 = vpack.c.bf16 %v1273_v53, %v1273_v53 }
 0x3da   : > { %v947_v23 = vrot.slane %v939_v18, %v2634_v56  ;;  %v954_v24 = vrot.slane %v940_v19, %v2634_v56  ;;  %v963_v26 = vrot.slane %v955_v21, %v2634_v56  ;;  %v970_v27 = vrot.slane %v956_v22, %v2634_v56 }
 0x3dc   : > { %v975_v29 = vcombine.low %v947_v23, %v954_v24  ;;  %v1916_v30 = vcombine.high %v947_v23, %v954_v24  ;;  %v991_v31 = vcombine.low %v963_v26, %v970_v27  ;;  %v1917_v32 = vcombine.high %v963_v26, %v970_v27 }
 0x3dd   : > { %v2205_v46 = vpop.eup %2204 }
 0x3de   : > { %v982_v33 = vrot.slane %v975_v29, %v2631_v49  ;;  %v990_v34 = vrot.slane %v1916_v30, %v2631_v49  ;;  %v998_v35 = vrot.slane %v991_v31, %v2631_v49  ;;  %v1006_v36 = vrot.slane %v1917_v32, %v2631_v49 }
 0x3df   : > { %v1274_v54 = vmul.f32 %v2205_v46, %v2699_v55 }
 0x3e0   : > { %v1007_v37 = vcombine.low %v982_v33, %v990_v34  ;;  %v1023_v38 = vcombine.low %v998_v35, %v1006_v36  ;;  %v1008_v39 = vcombine.high %v982_v33, %v990_v34  ;;  %v1024_v40 = vcombine.high %v998_v35, %v1006_v36 }
 0x3e1   : > { %v1278_v62 = vpack.c.bf16 %v1274_v54, %v1274_v54  ;;  %v2193_v54 = vld [vmem:[#allocation8] sm:$0xff]  }
 0x3e2   : > { %v1015_v42 = vrot.slane %v1007_v37, %v2634_v56  ;;  %v1031_v43 = vrot.slane %v1023_v38, %v2634_v56  ;;  %v1022_v44 = vrot.slane %v1008_v39, %v2634_v56  ;;  %v1038_v45 = vrot.slane %v1024_v40, %v2634_v56 }
 0x3e4   : > { %v1039_v47 = vcombine.low %v1015_v42, %v1031_v43  ;;  %v1040_v48 = vcombine.high %v1015_v42, %v1031_v43  ;;  %v1041_v25 = vcombine.low %v1022_v44, %v1038_v45  ;;  %v1042_v50 = vcombine.high %v1022_v44, %v1038_v45  ;;  %v2192_v44 = vld [vmem:[#allocation8 + $0x8] sm:$0xff]  }
 0x3e6   : > { %v1043_v51 = vpack.c.bf16 %v1039_v47, %v1039_v47  ;;  %v1044_v52 = vpack.c.bf16 %v1040_v48, %v1040_v48  ;;  %v1045_v59 = vpack.c.bf16 %v1041_v25, %v1041_v25  ;;  %v1046_v60 = vpack.c.bf16 %v1042_v50, %v1042_v50 }
 0x3e8   : > { %v1286_v57 = vsel %vm1284_vm3, %v1043_v51, 0  ;;  %v1332_v58 = vsel %vm1284_vm3, %v1044_v52, 0  ;;  %v1378_v28 = vsel %vm1284_vm3, %v1045_v59, 0  ;;  %v1424_v55 = vsel %vm1284_vm3, %v1046_v60, 0 }
 0x3e9   : > { %2022 = vmatpush3.bf16.msra.mxu0 %v1286_v57  ;;  %2028 = vmatpush3.bf16.msra.mxu1 %v1332_v58 }
 0x3ea   : > { %2033 = vmatprep.subr.bf16.mxu0 %v2401_v20  ;;  %2039 = vmatprep.subr.bf16.mxu1 %v2401_v20 }
 0x3ec   : > { %2024 = vmatmul.mubr.msk.bf16.vlgmr.msra.gmra.mxu0 %vm1232_vm2, %v1277_v61  ;;  %2030 = vmatmul.mubr.msk.bf16.vlgmr.msra.gmra.mxu1 %vm1232_vm2, %v1278_v62 }
 0x3ed   : > { %2034 = vmatpush3.bf16.msra.mxu0 %v1378_v28  ;;  %2040 = vmatpush3.bf16.msra.mxu1 %v1424_v55 }
 0x3ee   : > { %2035 = vmatprep.mubr.msk.bf16.mxu0 %vm2405_vm0, %v2401_v20  ;;  %2041 = vmatprep.mubr.msk.bf16.mxu1 %vm2405_vm0, %v2401_v20 }
 0x3ef   : > { %2045 = vmatprep.subr.bf16.mxu0 %v2401_v20 }
 0x3fc   : > { %v1265_v63 = vpop.xlane.xlu1 %1264 }
 0x3fd   : > { %2206 = vrcp.f32 %v1265_v63 }
 0x404   : > { %v1268_v1 = vpop.xlane.xlu0 %1267 }
 0x405   : > { %2208 = vrcp.f32 %v1268_v1 }
 0x40a   : > { %v2207_v3 = vpop.eup %2206 }
 0x40b   : > { %v1275_v4 = vmul.f32 %v2207_v3, %v2705_v0  ;;  %v2189_v0 = vld [vmem:[#allocation8 + $0x20] sm:$0xff]  }
 0x40d   : > { %v1279_v5 = vpack.c.bf16 %v1275_v4, %v1275_v4 }
 0x40f   : > { %2036 = vmatmul.mubr.msk.bf16.vlgmr.msra.gmra.mxu0 %vm1232_vm2, %v1279_v5 }
 0x410   : > { %2061 = vmatprep.mubr.msk.bf16.mxu0 %vm2405_vm0, %v2401_v20  ;;  %2046 = vmatpush3.bf16.msra.mxu0 %v2186_v9 }
 0x411   : > { %2047 = vmatprep.subr.bf16.mxu0 %v2401_v20 }
 0x412   : > { %v2209_v6 = vpop.eup %2208 }
 0x413   : > { %v1276_v7 = vmul.f32 %v2209_v6, %v2709_v2  ;;  %v2191_v2 = vld [vmem:[#allocation8 + $0x10] sm:$0xff]  }
 0x414   : > { %2048 = vmatpush3.bf16.msra.mxu0 %v2187_v10 }
 0x415   : > { %v1280_v8 = vpack.c.bf16 %v1276_v7, %v1276_v7  ;;  %2049 = vmatprep.subr.bf16.mxu0 %v2401_v20 }
 0x417   : > { %2042 = vmatmul.mubr.msk.bf16.vlgmr.msra.gmra.mxu1 %vm1232_vm2, %v1280_v8 }
 0x418   : > { %2050 = vmatpush3.bf16.msra.mxu0 %v2188_v11 }
 0x419   : > { %2051 = vmatprep.subr.bf16.mxu0 %v2401_v20 }
 0x41c   : > { %2052 = vmatpush3.bf16.msra.mxu0 %v2189_v0 }
 0x41d   : > { %2053 = vmatprep.subr.bf16.mxu0 %v2401_v20 }
 0x420   : > { %2054 = vmatpush3.bf16.msra.mxu0 %v2190_v12  ;;  %v1928_v12 = vld [vmem:[%s2828_s4] ss:$0 sm:$0xff] }
 0x421   : > { %2055 = vmatprep.subr.bf16.mxu0 %v2401_v20 }
 0x424   : > { %2056 = vmatpush3.bf16.msra.mxu0 %v2191_v2 }
 0x425   : > { %2057 = vmatprep.subr.bf16.mxu0 %v2401_v20 }
 0x428   : > { %2058 = vmatpush3.bf16.msra.mxu0 %v2192_v44 }
 0x429   : > { %2059 = vmatprep.subr.bf16.mxu0 %v2401_v20 }
 0x42c   : > { %2060 = vmatpush3.bf16.msra.mxu0 %v2193_v54 }
 0x4ac   : > { %v1322_v13 = vpop.f32.mrf.mxu0  ;;  %v1368_v14 = vpop.f32.mrf.mxu1 }
 0x4ae   : > { %v2025_v15 = vpop.f32.mrf.mxu0  ;;  %v2031_v16 = vpop.f32.mrf.mxu1 }
 0x4b0   : > { %v1325_v18 = vpop.f32.mrf.mxu0  ;;  %v1371_v19 = vpop.f32.mrf.mxu1 }
 0x4b2   : > { %v2026_v21 = vpop.f32.mrf.mxu0  ;;  %v2032_v22 = vpop.f32.mrf.mxu1 }
 0x4cf   : > { %v1414_v23 = vpop.f32.mrf.mxu0 }
 0x4d0   : > { %v1466_v29 = vcombine.low %v1322_v13, %v1414_v23  ;;  %v1467_v30 = vcombine.high %v1322_v13, %v1414_v23 }
 0x4d1   : > { %v2037_v24 = vpop.f32.mrf.mxu0 }
 0x4d2   : > { %v1474_v35 = vrot.slane %v1466_v29, %v2631_v49  ;;  %v1481_v36 = vrot.slane %v1467_v30, %v2631_v49 }
 0x4d3   : > { %v1417_v26 = vpop.f32.mrf.mxu0 }
 0x4d5   : > { %v2038_v27 = vpop.f32.mrf.mxu0 }
 0x4d7   : > { %v1460_v31 = vpop.f32.mrf.mxu1 }
 0x4d8   : > { %v1482_v32 = vcombine.low %v1368_v14, %v1460_v31  ;;  %v1483_v33 = vcombine.high %v1368_v14, %v1460_v31  ;;  %v1938_v31 = vld [vmem:[%s2830_s6] ss:$0 sm:$0xff] }
 0x4d9   : > { %v2043_v34 = vpop.f32.mrf.mxu1 }
 0x4da   : > { %v1490_v37 = vrot.slane %v1482_v32, %v2631_v49  ;;  %v1497_v38 = vrot.slane %v1483_v33, %v2631_v49 }
 0x4db   : > { %v1463_v39 = vpop.f32.mrf.mxu1 }
 0x4dc   : > { %v1498_v40 = vcombine.low %v1474_v35, %v1490_v37  ;;  %v1499_v41 = vcombine.high %v1474_v35, %v1490_v37  ;;  %v1514_v42 = vcombine.low %v1481_v36, %v1497_v38  ;;  %v1515_v43 = vcombine.high %v1481_v36, %v1497_v38 }
 0x4dd   : > { %v2044_v45 = vpop.f32.mrf.mxu1 }
 0x4de   : > { %v1506_v46 = vrot.slane %v1498_v40, %v2634_v56  ;;  %v1513_v47 = vrot.slane %v1499_v41, %v2634_v56  ;;  %v1522_v48 = vrot.slane %v1514_v42, %v2634_v56  ;;  %v1529_v25 = vrot.slane %v1515_v43, %v2634_v56 }
 0x4e0   : > { %v1534_v50 = vcombine.low %v1506_v46, %v1513_v47  ;;  %v1926_v51 = vcombine.high %v1506_v46, %v1513_v47  ;;  %v1550_v52 = vcombine.low %v1522_v48, %v1529_v25  ;;  %v1927_v53 = vcombine.high %v1522_v48, %v1529_v25 }
 0x4e2   : > { %v1541_v57 = vrot.slane %v1534_v50, %v2631_v49  ;;  %v1549_v58 = vrot.slane %v1926_v51, %v2631_v49  ;;  %v1557_v59 = vrot.slane %v1550_v52, %v2631_v49  ;;  %v1565_v60 = vrot.slane %v1927_v53, %v2631_v49 }
 0x4e4   : > { %v1567_v61 = vcombine.high %v1541_v57, %v1549_v58  ;;  %v1583_v62 = vcombine.high %v1557_v59, %v1565_v60  ;;  %v1566_v28 = vcombine.low %v1541_v57, %v1549_v58  ;;  %v1582_v55 = vcombine.low %v1557_v59, %v1565_v60 }
 0x4e6   : > { %v1581_v20 = vrot.slane %v1567_v61, %v2634_v56  ;;  %v1597_v63 = vrot.slane %v1583_v62, %v2634_v56  ;;  %v1574_v1 = vrot.slane %v1566_v28, %v2634_v56  ;;  %v1590_v3 = vrot.slane %v1582_v55, %v2634_v56 }
 0x4e8   : > { %v1600_v4 = vcombine.low %v1581_v20, %v1597_v63  ;;  %v1599_v5 = vcombine.high %v1574_v1, %v1590_v3  ;;  %v1598_v6 = vcombine.low %v1574_v1, %v1590_v3  ;;  %v1601_v49 = vcombine.high %v1581_v20, %v1597_v63 }
 0x4ea   : > { %1607 = vrot.lane.b32.xlu1 %v1600_v4, %s2404_s11  ;;  %1603 = vrot.lane.b32.xlu0 %v1599_v5, %s2402_s30  ;;  %s1773_s30 = scalar_lea.hbm %s2831_s7, %s1940_s16  ;;  %s2318_s11 = scalar_lea.vmem %s1776_s12, 128 }
 0x4eb   : > { %p2319_p4 = scmp.ne.s32.totalorder %s1776_s12, %s2318_s11  ;;  %p2326_p3 = scmp.lt.s32.totalorder %s2324_s28, %s2318_s11 }
 0x4ed   : > { %p2320_p12 = pnand %p2319_p4, %p2853_p6  ;;  %p2327_p7 = por %p2326_p3, %p2325_p5 }
 0x4ee   : > { %1611 = vrot.lane.b32.xlu1 %v1601_v49, %s2403_s9  ;;  %s1762_s9 = scalar_lea.sflag [#allocation4], %s2575_s19 }
 0x4ef   : > { %p2321_p0 = pneg %p2320_p12 }
 0x4f1   : > { %p2328_p9 = pnand %p2327_p7, %p2321_p0 }
 0x55c   : > { %v1608_v7 = vpop.permute.xlu1 %1607  ;;  %v1604_v8 = vpop.permute.xlu0 %1603 }
 0x55d   : > { %v1614_v9 = vsel %vm1047_vm1, %v1598_v6, %v1604_v8 }
 0x55e   : > { %v1616_v11 = vsel %vm1615_vm4, %v1614_v9, %v1608_v7 }
 0x560   : > { %v1612_v10 = vpop.permute.xlu1 %1611 }
 0x561   : > { %v1618_v0 = vsel %vm1617_vm5, %v1616_v11, %v1612_v10 }
 0x562   : > { %v1619_v56 = vpack.c.bf16 %v1618_v0, %v1618_v0 }
 0x564   : > { %2062 = vmatmul.mubr.bf16.vlgmr.msra.gmra.mxu0 %v1619_v56 }
 0x624   : > { %v1725_v2 = vpop.f32.mrf.mxu0 }
 0x625   : > { %v1726_v13 = vadd.f32 %v1928_v12, %v1725_v2 }
 0x626   : > { %v2063_v14 = vpop.f32.mrf.mxu0 }
 0x627   : > { %v1731_v15 = vadd.f32 %v1726_v13, %v2596_v17  ;;  %v1937_v17 = vld [vmem:[%s2829_s5] ss:$0 sm:$0xff] }
 0x628   : > { %v1728_v16 = vpop.f32.mrf.mxu0 }
 0x629   : > { %1732 = vadd.xlane.f32.xlu0 %v1731_v15 }
 0x62a   : > { %v2064_v18 = vpop.f32.mrf.mxu0 }
 0x6b2   : > { %v1733_v19 = vpop.xlane.xlu0 %1732 }
 0x6b3   : > { %v1735_v21 = vmul.f32 0.0078125, %v1733_v19 }
 0x6b5   : > { %v1736_v22 = vsub.f32 %v1731_v15, %v1735_v21 }
 0x6b7   : > { %v1737_v23 = vmul.f32 %v1736_v22, %v1736_v22 }
 0x6b9   : > { %1738 = vadd.xlane.f32.xlu1 %v1737_v23 }
 0x742   : > { %v1739_v24 = vpop.xlane.xlu1 %1738 }
 0x743   : > { %v1740_v26 = vmul.f32 0.0078125, %v1739_v24 }
 0x745   : > { %v1741_v27 = vadd.f32 1e-05, %v1740_v26 }
 0x747   : > { %2210 = vrsqrt.f32 %v1741_v27 }
 0x754   : > { %v2211_v29 = vpop.eup %2210 }
 0x755   : > { %v1743_v30 = vmul.f32 %v2211_v29, %v1736_v22 }
 0x757   : > { %v1751_v32 = vmul.f32 %v1937_v17, %v1743_v30 }
 0x759   : > { %v1759_v33 = vadd.f32 %v1938_v31, %v1751_v32 }
 0x75b   : > { %1760 = vst [vmem:[%s335_s13] sm:$0xff] %v1759_v33 }
 0x75c   : > { %2331 = shalt.err (!%p2328_p9)
}
 0x75d   : > { %s2332_s20 = scalar_lea.hbm %s1773_s30, 128  ;;  %s2336_s23 = scalar_lea.hbm %s2831_s7, 256 }
 0x75e   : > { %p2333_p13 = scmp.ne.s32.totalorder %s1773_s30, %s2332_s20  ;;  %p2337_p11 = scmp.lt.s32.totalorder %s1773_s30, %s2831_s7 }
 0x75f   : > { %p2338_p1 = scmp.lt.s32.totalorder %s2336_s23, %s2332_s20 }
 0x760   : > { %p2334_p8 = pnand %p2333_p13, %p2853_p6 }
 0x761   : > { %p2339_p2 = por %p2338_p1, %p2337_p11 }
 0x762   : > { %p2335_p10 = pneg %p2334_p8 }
 0x764   : > { %p2340_p4 = pnand %p2339_p2, %p2335_p10 }
 0x766   : > { %2343 = shalt.err (!%p2340_p4)
}
 0x767   : > { %2079 = dma.vmem_to_hbm [thread:$0]  (%p2853_p6), %s1776_s12, 128, %s1773_s30, %s1762_s9  }
 0x768 PF: > { %s1787_s16 = sand.u32 1, %s2378_s24   ;;  %p2854_p12 = scmp.ne.s32.totalorder %s2839_s8, 0 }
 0x769   : > { %p2855_p0 = scmp.ge.s32.totalorder %s2390_s27, 2  ;;  %s1788_s13 = scalar_lea.sflag [#allocation4], %s1787_s16 }
 0x76b   : > { %p2096_p5 = pnand %p2855_p0, %p2854_p12 }
 0x76d   : > { %p2097_p3 = pneg %p2096_p5 }
 0x76f   : > { %2373 = dma.done.wait (%p2097_p3), %s1788_s13, 128  }
 0x770   : > { %2375 = vsyncadd (%p2097_p3), %s1788_s13, 4294967168  ;;  %p22_p7 = scmp.ge.s32.totalorder %s2529_s18, 4   ;;  %s2856_s24 = smov %s2382_s25 }
 0x771   : > { %s2857_s25 = smov %s2386_s26  ;;  %s2858_s26 = smov %s2539_s21 }
 0x772   : > { %s2859_s27 = smov %s2529_s18  ;;  %24 = sbr.rel (!%p22_p7) target bundleno = 10 (0xa), region = 105 }
 0x777   :  { %1793 = vsyncpa [#allocation3], 1 }
 0x778   :  { %1795 = vsyncpa [#allocation3 + $0x1], 1 }
 0x779   :  { %1796 = vsyncpa [#allocation6], 1 }
 0x77a   :  { %1797 = vsyncpa [#allocation9], 1 }
 0x77b   :  { %1798 = vsyncpa [#allocation4], 1 }
 0x77c   :  { %1800 = vsyncpa [#allocation4 + $0x1], 1 }

</bundles_post_ra>
